<compile_context>
chip_gen: v7x
topology: tpu7x:2x2x1
jax: 0.10.0
libtpu: 0.0.40
codegen_flags: <defaults>
</compile_context>

<pallas_src>
import math
from functools import partial

import jax
import jax.numpy as jnp
from jax.experimental import pallas as pl
from jax.experimental.pallas import tpu as pltpu


# ------------------------------------------------------------------ helpers

def _pick_batch_tile(B: int, max_tile: int = 512) -> int:
    """Batch tile: full batch if small, else the largest multiple of 128 dividing B."""
    if B <= max_tile:
        return B
    t = (max_tile // 128) * 128
    while t >= 128:
        if B % t == 0:
            return t
        t -= 128
    return B  # fall back to a single (large) block


# ------------------------------------------------------------------ Pallas kernels

def _update_kernel(samples_ref, mean_ref, cov_ref, new_mean_ref, new_cov_ref,
                   sum_sc, xx_sc, *, decay: float, batch: int):
    """EMA update of (mean, cov). Grid = (L, B//tB); batch axis is a reduction axis.

    Accumulates sum(x) and sum(x x^T) in f32 VMEM scratch, then finalizes
    cov = E[xx^T] - mean mean^T and blends: new = decay*old + (1-decay)*batch_stat.
    """
    b = pl.program_id(1)

    @pl.when(b == 0)
    def _init():
        sum_sc[...] = jnp.zeros_like(sum_sc)
        xx_sc[...] = jnp.zeros_like(xx_sc)

    x = samples_ref[...]                                          # (tB, D)
    sum_sc[...] += jnp.sum(x, axis=0, keepdims=True)              # (1, D)  VPU/XLU
    xx_sc[...] += jax.lax.dot_general(                            # x^T @ x on the MXU
        x, x, dimension_numbers=(((0,), (0,)), ((), ())),
        preferred_element_type=jnp.float32)                       # (D, D)

    @pl.when(b == pl.num_programs(1) - 1)
    def _finalize():
        inv_b = 1.0 / batch
        bm = sum_sc[...] * inv_b                                  # (1, D) batch mean
        e_xx = xx_sc[...] * inv_b                                 # (D, D) E[x x^T]
        outer = jax.lax.dot_general(                              # bm^T @ bm (K=1 matmul)
            bm, bm, dimension_numbers=(((0,), (0,)), ((), ())),
            preferred_element_type=jnp.float32)                   # (D, D)
        batch_cov = e_xx - outer
        # utils.ema(old, new, decay) == decay * old + (1 - decay) * new
        new_mean_ref[...] = decay * mean_ref[...] + (1.0 - decay) * bm         # (1, D)
        new_cov_ref[...] = decay * cov_ref[...] + (1.0 - decay) * batch_cov    # (D, D)


def _predict_kernel(samples_ref, mean_ref, prec_ref, bias_ref, logp_ref):
    """Gaussian log-prob: -0.5 * (diff^T P diff + D*log(2pi) + logdet), lane-dense output."""
    x = samples_ref[...]                                          # (tB, D)
    diff = x - mean_ref[...]                                      # (tB, D) - (1, D)
    t = jnp.dot(diff, prec_ref[...], preferred_element_type=jnp.float32)   # (tB, D) MXU
    quad = jnp.sum(t * diff, axis=-1)                             # (tB,)  XLU row-reduce
    bias = bias_ref[pl.program_id(0)]                             # scalar from SMEM
    tB = quad.shape[0]
    logp_ref[...] = (-0.5 * (quad + bias)).reshape(1, tB)         # lane-dense store (1, tB)


# ------------------------------------------------------------------ pallas_call wrappers

@partial(jax.jit, static_argnames=("decay", "batch_tile"), donate_argnums=(1, 2))
def ema_gaussian_update(samples, mean, cov, *, decay: float, batch_tile: int):
    """samples: (L,B,D) f32, mean: (L,1,D), cov: (L,D,D) -> (new_mean, new_cov) (in place)."""
    L, B, D = samples.shape
    tB = batch_tile
    nb = B // tB
    kernel = partial(_update_kernel, decay=float(decay), batch=B)
    return pl.pallas_call(
        kernel,
        out_shape=(jax.ShapeDtypeStruct((L, 1, D), jnp.float32),
                   jax.ShapeDtypeStruct((L, D, D), jnp.float32)),
        grid=(L, nb),
        in_specs=[
            pl.BlockSpec((None, tB, D), lambda l, b: (l, b, 0)),   # samples tile
            pl.BlockSpec((None, 1, D), lambda l, b: (l, 0, 0)),    # old mean (resident over b)
            pl.BlockSpec((None, D, D), lambda l, b: (l, 0, 0)),    # old cov  (resident over b)
        ],
        out_specs=(pl.BlockSpec((None, 1, D), lambda l, b: (l, 0, 0)),
                   pl.BlockSpec((None, D, D), lambda l, b: (l, 0, 0))),
        scratch_shapes=[pltpu.VMEM((1, D), jnp.float32),           # sum(x)
                        pltpu.VMEM((D, D), jnp.float32)],          # sum(x x^T)
        input_output_aliases={1: 0, 2: 1},                         # mean->new_mean, cov->new_cov
        compiler_params=pltpu.CompilerParams(
            dimension_semantics=("parallel", "arbitrary"),
            vmem_limit_bytes=32 * 1024 * 1024),
        # TODO(synk): for v7x (64 MiB VMEM) with D >= 2048, tile the (D,D) cov block as well.
    )(samples, mean, cov)


@partial(jax.jit, static_argnames=("batch_tile",))
def gaussian_log_prob(samples, mean, precision, bias, *, batch_tile: int):
    """samples: (L,B,D), mean: (L,1,D), precision: (L,D,D), bias: (L,) -> logp (L,B)."""
    L, B, D = samples.shape
    tB = batch_tile
    nb = B // tB
    logp = pl.pallas_call(
        _predict_kernel,
        out_shape=jax.ShapeDtypeStruct((L, 1, B), jnp.float32),    # batch on lanes
        grid=(L, nb),
        in_specs=[
            pl.BlockSpec((None, tB, D), lambda l, b: (l, b, 0)),   # samples tile
            pl.BlockSpec((None, 1, D), lambda l, b: (l, 0, 0)),    # mean
            pl.BlockSpec((None, D, D), lambda l, b: (l, 0, 0)),    # precision
            pl.BlockSpec(memory_space=pltpu.MemorySpace.SMEM),     # (L,) bias scalars in SMEM
        ],
        out_specs=pl.BlockSpec((None, 1, tB), lambda l, b: (l, 0, b)),
        compiler_params=pltpu.CompilerParams(
            dimension_semantics=("parallel", "parallel"),
            vmem_limit_bytes=32 * 1024 * 1024),
    )(samples, mean, precision, bias)
    return logp.reshape(L, B)


# ------------------------------------------------------------------ Model wrapper (glue)

class GaussianDistributionModel:
    """Concrete JAX instantiation of `DistributionModel` (full-covariance Gaussian)."""

    def __init__(self, *size: int, reduce_on_update: bool = True,
                 update_decay: float = 0.9, update_with_autograd: bool = False,
                 batch_tile: int = 512, key=None):
        self.leading_shape = tuple(size[:-1])
        self.dim = size[-1]
        self.reduce_on_update = reduce_on_update
        self.decay = update_decay
        self.update_with_autograd = update_with_autograd
        self.max_batch_tile = batch_tile
        self.training = True

        # Buffers from the PyTorch __init__ (deterministic synthetic init, not a checkpoint).
        k1, k2 = jax.random.split(key if key is not None else jax.random.PRNGKey(42))
        L = int(math.prod(self.leading_shape)) if self.leading_shape else 1
        D = self.dim
        self._L = L
        self.vec_init = jax.random.normal(k1, (L, D), jnp.float32)       # [*leading, dim]
        self.mat_init = jax.random.normal(k2, (L, D, D), jnp.float32)    # [*leading, dim, dim]

        # Internal Gaussian state seeded from the buffers (concrete-subclass choice).
        self.mean = self.vec_init[:, None, :]                             # (L, 1, D)
        self.cov = (jnp.einsum('lij,lkj->lik', self.mat_init, self.mat_init) / D
                    + jnp.eye(D, dtype=jnp.float32)[None])                # (L, D, D) PSD

    @property
    def vec_shape(self):
        return (*self.leading_shape, self.dim)

    def _validate_samples(self, samples):
        # NOTE: the original PyTorch code constructs ValueError without raising it,
        # so validation is effectively a no-op; we mirror the (cheap) checks here.
        assert samples.shape[-1] == self.dim
        assert samples.shape[:-2] == self.leading_shape

    def update(self, samples):
        # TODO(synk): `reduce_on_update` DDP all-reduce across processes is skipped (single device).
        B = samples.shape[-2]
        s = samples.reshape(self._L, B, self.dim)
        tB = _pick_batch_tile(B, self.max_batch_tile)
        self.mean, self.cov = ema_gaussian_update(
            s, self.mean, self.cov, decay=self.decay, batch_tile=tB)

    def predict(self, samples):
        B = samples.shape[-2]
        s = samples.reshape(self._L, B, self.dim)
        # Tiny (D x D) inverse / logdet stay in plain-JAX glue; quadratic form runs in Pallas.
        # TODO(synk): a Cholesky-based precision solve / logdet would be more robust numerically.
        precision = jnp.linalg.inv(self.cov)
        _, logdet = jnp.linalg.slogdet(self.cov)
        bias = (self.dim * math.log(2.0 * math.pi) + logdet).astype(jnp.float32)   # (L,)
        tB = _pick_batch_tile(B, self.max_batch_tile)
        logp = gaussian_log_prob(s, self.mean, precision, bias, batch_tile=tB)     # (L, B)
        return logp.reshape(*self.leading_shape, B)

    def forward(self, samples):
        self._validate_samples(samples)
        if self.training and not self.update_with_autograd:
            self.update(samples)
        return self.predict(samples)


# ------------------------------------------------------------------ pure-JAX reference

def reference_forward(samples, mean0, cov0, decay):
    L, B, D = samples.shape
    bm = samples.mean(axis=-2, keepdims=True)
    centered = samples - bm
    bc = jnp.einsum('lbi,lbj->lij', centered, centered) / B
    new_mean = decay * mean0 + (1.0 - decay) * bm
    new_cov = decay * cov0 + (1.0 - decay) * bc
    prec = jnp.linalg.inv(new_cov)
    _, logdet = jnp.linalg.slogdet(new_cov)
    diff = samples - new_mean
    quad = jnp.einsum('lbi,lij,lbj->lb', diff, prec, diff)
    return -0.5 * (quad + D * math.log(2.0 * math.pi) + logdet[:, None])


if __name__ == "__main__":
    key = jax.random.PRNGKey(0)
    k_samples, k_model = jax.random.split(key)

    L, B, D = 2, 16, 32                       # leading_shape=(2,), batch=16, dim=32
    samples = jax.random.normal(k_samples, (L, B, D), jnp.float32)

    model = GaussianDistributionModel(L, D, update_decay=0.9, key=k_model)

    # Compute (and materialize) the reference BEFORE forward(): the update kernel
    # donates/aliases the mean/cov buffers and overwrites them in place.
    ref = jax.block_until_ready(reference_forward(samples, model.mean, model.cov, 0.9))

    out = model.forward(samples)              # update (EMA fit) + predict (log-prob)
    out = jax.block_until_ready(out)

    assert out.shape == (L, B)
    assert jnp.allclose(out, ref, rtol=1e-4, atol=1e-4), "mismatch vs pure-JAX reference"

    print("KERNEL_OK")
</pallas_src>

<mosaic_0001>
module attributes {stable_mosaic.version = 11 : i64} {
  func.func @_update_kernel(%arg0: i32, %arg1: i32, %arg2: memref<1x16x32xf32, #tpu.memory_space<vmem>>, %arg3: memref<1x1x32xf32, #tpu.memory_space<vmem>>, %arg4: memref<1x32x32xf32, #tpu.memory_space<vmem>>, %arg5: memref<1x1x32xf32, #tpu.memory_space<vmem>>, %arg6: memref<1x32x32xf32, #tpu.memory_space<vmem>>, %arg7: memref<1x32xf32, #tpu.memory_space<vmem>>, %arg8: memref<32x32xf32, #tpu.memory_space<vmem>>) attributes {dimension_semantics = [#tpu.dimension_semantics<parallel>, #tpu.dimension_semantics<arbitrary>], iteration_bounds = array<i64: 2, 1>, scalar_prefetch = 0 : i64, scratch_operands = 2 : i64, tpu.core_type = #tpu.core_type<tc>, window_params = [{transform_indices = @transform_0, window_bounds = array<i64: 1, 16, 32>}, {transform_indices = @transform_1, window_bounds = array<i64: 1, 1, 32>}, {transform_indices = @transform_2, window_bounds = array<i64: 1, 32, 32>}, {transform_indices = @transform_3, window_bounds = array<i64: 1, 1, 32>}, {transform_indices = @transform_4, window_bounds = array<i64: 1, 32, 32>}]} {
    %c0_i32 = arith.constant 0 : i32
    %0 = arith.cmpi eq, %arg1, %c0_i32 : i32
    %1 = arith.extui %0 : i1 to i32
    %c0_i32_0 = arith.constant 0 : i32
    %2 = arith.cmpi ne, %1, %c0_i32_0 : i32
    scf.if %2 {
      %cst_14 = arith.constant 0.000000e+00 : f32
      %17 = vector.broadcast %cst_14 : f32 to vector<1x32xf32>
      %c0_15 = arith.constant 0 : index
      %c0_16 = arith.constant 0 : index
      %18 = vector.load %arg7[%c0_15, %c0_16] : memref<1x32xf32, #tpu.memory_space<vmem>>, vector<1x32xf32>
      tpu.vector_store %arg7[%c0_15, %c0_16], %17 {strides = array<i32>} : memref<1x32xf32, #tpu.memory_space<vmem>>, vector<1x32xf32>,
      %cst_17 = arith.constant 0.000000e+00 : f32
      %19 = vector.broadcast %cst_17 : f32 to vector<32x32xf32>
      %c0_18 = arith.constant 0 : index
      %c0_19 = arith.constant 0 : index
      %20 = vector.load %arg8[%c0_18, %c0_19] : memref<32x32xf32, #tpu.memory_space<vmem>>, vector<32x32xf32>
      tpu.vector_store %arg8[%c0_18, %c0_19], %19 {strides = array<i32>} : memref<32x32xf32, #tpu.memory_space<vmem>>, vector<32x32xf32>,
    } else {
    }
    %c0 = arith.constant 0 : index
    %c0_1 = arith.constant 0 : index
    %c0_2 = arith.constant 0 : index
    %3 = vector.load %arg2[%c0, %c0_1, %c0_2] : memref<1x16x32xf32, #tpu.memory_space<vmem>>, vector<1x16x32xf32>
    %4 = vector.shape_cast %3 : vector<1x16x32xf32> to vector<16x32xf32>
    %c0_3 = arith.constant 0 : index
    %c0_4 = arith.constant 0 : index
    %5 = vector.load %arg7[%c0_3, %c0_4] : memref<1x32xf32, #tpu.memory_space<vmem>>, vector<1x32xf32>
    %cst = arith.constant dense<0.000000e+00> : vector<32xf32>
    %6 = vector.multi_reduction <add>, %4, %cst [0] : vector<16x32xf32> to vector<32xf32>
    %7 = vector.shape_cast %6 : vector<32xf32> to vector<1x32xf32>
    %8 = arith.addf %5, %7 : vector<1x32xf32>
    %c0_5 = arith.constant 0 : index
    %c0_6 = arith.constant 0 : index
    %9 = vector.load %arg7[%c0_5, %c0_6] : memref<1x32xf32, #tpu.memory_space<vmem>>, vector<1x32xf32>
    tpu.vector_store %arg7[%c0_5, %c0_6], %8 {strides = array<i32>} : memref<1x32xf32, #tpu.memory_space<vmem>>, vector<1x32xf32>,
    %c0_7 = arith.constant 0 : index
    %c0_8 = arith.constant 0 : index
    %10 = vector.load %arg8[%c0_7, %c0_8] : memref<32x32xf32, #tpu.memory_space<vmem>>, vector<32x32xf32>
    %cst_9 = arith.constant dense<0.000000e+00> : vector<32x32xf32>
    %11 = tpu.matmul %4, %4, %cst_9 {dimension_numbers = #tpu.dot_dimension_numbers<[0], [0], [1], [1], [0, 1, 1, 1], [], []>} : vector<16x32xf32>, vector<16x32xf32>, vector<32x32xf32> -> vector<32x32xf32>
    %12 = arith.addf %10, %11 : vector<32x32xf32>
    %c0_10 = arith.constant 0 : index
    %c0_11 = arith.constant 0 : index
    %13 = vector.load %arg8[%c0_10, %c0_11] : memref<32x32xf32, #tpu.memory_space<vmem>>, vector<32x32xf32>
    tpu.vector_store %arg8[%c0_10, %c0_11], %12 {strides = array<i32>} : memref<32x32xf32, #tpu.memory_space<vmem>>, vector<32x32xf32>,
    %c0_i32_12 = arith.constant 0 : i32
    %14 = arith.cmpi eq, %arg1, %c0_i32_12 : i32
    %15 = arith.extui %14 : i1 to i32
    %c0_i32_13 = arith.constant 0 : i32
    %16 = arith.cmpi ne, %15, %c0_i32_13 : i32
    scf.if %16 {
      %c0_14 = arith.constant 0 : index
      %c0_15 = arith.constant 0 : index
      %17 = vector.load %arg7[%c0_14, %c0_15] : memref<1x32xf32, #tpu.memory_space<vmem>>, vector<1x32xf32>
      %cst_16 = arith.constant 6.250000e-02 : f32
      %18 = vector.broadcast %cst_16 : f32 to vector<1x32xf32>
      %19 = arith.mulf %17, %18 : vector<1x32xf32>
      %c0_17 = arith.constant 0 : index
      %c0_18 = arith.constant 0 : index
      %20 = vector.load %arg8[%c0_17, %c0_18] : memref<32x32xf32, #tpu.memory_space<vmem>>, vector<32x32xf32>
      %cst_19 = arith.constant 6.250000e-02 : f32
      %21 = vector.broadcast %cst_19 : f32 to vector<32x32xf32>
      %22 = arith.mulf %20, %21 : vector<32x32xf32>
      %cst_20 = arith.constant dense<0.000000e+00> : vector<32x32xf32>
      %23 = tpu.matmul %19, %19, %cst_20 {dimension_numbers = #tpu.dot_dimension_numbers<[0], [0], [1], [1], [0, 1, 1, 1], [], []>} : vector<1x32xf32>, vector<1x32xf32>, vector<32x32xf32> -> vector<32x32xf32>
      %24 = arith.subf %22, %23 : vector<32x32xf32>
      %c0_21 = arith.constant 0 : index
      %c0_22 = arith.constant 0 : index
      %c0_23 = arith.constant 0 : index
      %25 = vector.load %arg3[%c0_21, %c0_22, %c0_23] : memref<1x1x32xf32, #tpu.memory_space<vmem>>, vector<1x1x32xf32>
      %26 = vector.shape_cast %25 : vector<1x1x32xf32> to vector<1x32xf32>
      %cst_24 = arith.constant 0.899999976 : f32
      %27 = vector.broadcast %cst_24 : f32 to vector<1x32xf32>
      %28 = arith.mulf %27, %26 : vector<1x32xf32>
      %cst_25 = arith.constant 1.000000e-01 : f32
      %29 = vector.broadcast %cst_25 : f32 to vector<1x32xf32>
      %30 = arith.mulf %29, %19 : vector<1x32xf32>
      %31 = arith.addf %28, %30 : vector<1x32xf32>
      %c0_26 = arith.constant 0 : index
      %c0_27 = arith.constant 0 : index
      %c0_28 = arith.constant 0 : index
      %32 = vector.load %arg5[%c0_26, %c0_27, %c0_28] : memref<1x1x32xf32, #tpu.memory_space<vmem>>, vector<1x1x32xf32>
      %33 = vector.shape_cast %32 : vector<1x1x32xf32> to vector<1x32xf32>
      %34 = vector.shape_cast %31 : vector<1x32xf32> to vector<1x1x32xf32>
      tpu.vector_store %arg5[%c0_26, %c0_27, %c0_28], %34 {strides = array<i32>} : memref<1x1x32xf32, #tpu.memory_space<vmem>>, vector<1x1x32xf32>,
      %c0_29 = arith.constant 0 : index
      %c0_30 = arith.constant 0 : index
      %c0_31 = arith.constant 0 : index
      %35 = vector.load %arg4[%c0_29, %c0_30, %c0_31] : memref<1x32x32xf32, #tpu.memory_space<vmem>>, vector<1x32x32xf32>
      %36 = vector.shape_cast %35 : vector<1x32x32xf32> to vector<32x32xf32>
      %cst_32 = arith.constant 0.899999976 : f32
      %37 = vector.broadcast %cst_32 : f32 to vector<32x32xf32>
      %38 = arith.mulf %37, %36 : vector<32x32xf32>
      %cst_33 = arith.constant 1.000000e-01 : f32
      %39 = vector.broadcast %cst_33 : f32 to vector<32x32xf32>
      %40 = arith.mulf %39, %24 : vector<32x32xf32>
      %41 = arith.addf %38, %40 : vector<32x32xf32>
      %c0_34 = arith.constant 0 : index
      %c0_35 = arith.constant 0 : index
      %c0_36 = arith.constant 0 : index
      %42 = vector.load %arg6[%c0_34, %c0_35, %c0_36] : memref<1x32x32xf32, #tpu.memory_space<vmem>>, vector<1x32x32xf32>
      %43 = vector.shape_cast %42 : vector<1x32x32xf32> to vector<32x32xf32>
      %44 = vector.shape_cast %41 : vector<32x32xf32> to vector<1x32x32xf32>
      tpu.vector_store %arg6[%c0_34, %c0_35, %c0_36], %44 {strides = array<i32>} : memref<1x32x32xf32, #tpu.memory_space<vmem>>, vector<1x32x32xf32>,
    } else {
    }
    return
  }
  func.func @transform_0(%arg0: i32, %arg1: i32) -> (i32, i32, i32) {
    %c0_i32 = arith.constant 0 : i32
    %c0_i32_0 = arith.constant 0 : i32
    return %arg0, %arg1, %c0_i32 : i32, i32, i32
  }
  func.func @transform_1(%arg0: i32, %arg1: i32) -> (i32, i32, i32) {
    %c0_i32 = arith.constant 0 : i32
    %c0_i32_0 = arith.constant 0 : i32
    %c0_i32_1 = arith.constant 0 : i32
    return %arg0, %c0_i32, %c0_i32_0 : i32, i32, i32
  }
  func.func @transform_2(%arg0: i32, %arg1: i32) -> (i32, i32, i32) {
    %c0_i32 = arith.constant 0 : i32
    %c0_i32_0 = arith.constant 0 : i32
    %c0_i32_1 = arith.constant 0 : i32
    return %arg0, %c0_i32, %c0_i32_0 : i32, i32, i32
  }
  func.func @transform_3(%arg0: i32, %arg1: i32) -> (i32, i32, i32) {
    %c0_i32 = arith.constant 0 : i32
    %c0_i32_0 = arith.constant 0 : i32
    %c0_i32_1 = arith.constant 0 : i32
    return %arg0, %c0_i32, %c0_i32_0 : i32, i32, i32
  }
  func.func @transform_4(%arg0: i32, %arg1: i32) -> (i32, i32, i32) {
    %c0_i32 = arith.constant 0 : i32
    %c0_i32_0 = arith.constant 0 : i32
    %c0_i32_1 = arith.constant 0 : i32
    return %arg0, %c0_i32, %c0_i32_0 : i32, i32, i32
  }
}

</mosaic_0001>

<bundles_post_ra>
// kernel: ema_gaussian_update.1
= control target key start
LH: loop header
LB: loop body
LE: loop exit
PB: predicated region body
PF: predicated region fallthrough
CT: control target
= control target key end

     0   :  { %s1547_s0 = inlined_call_operand.hbm [shape: f32[2,16,32], index: 0, kind: input, shape index: {}]   ;;  %s1548_s1 = inlined_call_operand.hbm [shape: f32[2,1,32], index: 1, kind: input, shape index: {}, may-alias: {1,3}]   ;;  %s1549_s2 = inlined_call_operand.hbm [shape: f32[2,32,32], index: 2, kind: input, shape index: {}, may-alias: {2,4}]   ;;  %s1550_s3 = inlined_call_operand.hbm [shape: f32[2,1,32], index: 3, kind: output, shape index: {0}, may-alias: {1,3}]   ;;  %s1551_s4 = inlined_call_operand.hbm [shape: f32[2,32,32], index: 4, kind: output, shape index: {1}, may-alias: {2,4}]  }
   0x1   :  { %1555 = sst [smem:[#allocation19_spill]] %s1547_s0 }
   0x2   :  { %1556 = sst [smem:[#allocation20_spill]] %s1548_s1 }
   0x3   :  { %10 = vsyncpa [#allocation5], 0 }
   0x4   :  { %12 = vsyncpa [#allocation5 + $0x1], 0 }
   0x5   :  { %13 = vsyncpa [#allocation8], 0 }
   0x6   :  { %15 = vsyncpa [#allocation8 + $0x1], 0 }
   0x7   :  { %16 = vsyncpa [#allocation6], 0 }
   0x8   :  { %18 = vsyncpa [#allocation6 + $0x1], 0 }
   0x9   :  { %19 = vsyncpa [#allocation12], 0 }
   0xa   :  { %21 = vsyncpa [#allocation12 + $0x1], 0  ;;  %s1235_s15 = smov 0   ;;  %s1237_s16 = smov 0  }
   0xb   :  { %s1239_s17 = smov 0   ;;  %s1241_s18 = smov 0  }
   0xc   :  { %s1243_s19 = smov 0   ;;  %s1245_s20 = smov 0  }
   0xd LB: > { %s1266_s21 = sadd.s32 4294967295, %s1198_s20   ;;  %s843_s22 = sadd.s32 4294967294, %s1198_s20   ;;  %s1198_s20 = sphi %s1245_s20, %s27_s20   ;;  %s1194_s19 = sphi %s1243_s19, %s1580_s19   ;;  %s1190_s18 = sphi %s1241_s18, %s1579_s18   ;;  %s1186_s17 = sphi %s1239_s17, %s1578_s17   ;;  %s1182_s16 = sphi %s1237_s16, %s1577_s16   ;;  %s1178_s15 = sphi %s1235_s15, %s1576_s15  }
   0xe   : > { %s39_s23 = sadd.s32 1, %s1194_s19  ;;  %s48_s24 = sadd.s32 1, %s1186_s17 }
   0xf   : > { %p41_p0 = scmp.ge.s32.totalorder %s39_s23, 2  ;;  %p55_p1 = scmp.ne.s32.totalorder %s1186_s17, %s1182_s16 }
  0x10   : > { %p56_p2 = scmp.eq.s32.totalorder %s1198_s20, 0  ;;  %p61_p3 = scmp.ne.s32.totalorder %s1182_s16, %s1178_s15 }
  0x11   : > { %s1582_s23 = smov (%p41_p0, %s39_s23), 0  ;;  %p62_p5 = scmp.eq.s32.totalorder %s1266_s21, 0 }
  0x12   : > { %1557 = sst [smem:[#allocation17_spill]] %s1582_s23  ;;  %p1278_p4 = por %p56_p2, %p55_p1 }
  0x13   : > { %s43_s26 = ssub.s32 %s1194_s19, %s1582_s23  ;;  %p137_p6 = scmp.eq.s32.totalorder %s1266_s21, 1 }
  0x14   : > { %p46_p7 = scmp.eq.s32.totalorder %s43_s26, 0  ;;  %p1286_p8 = por %p62_p5, %p61_p3 }
  0x15   : > { %p1290_p9 = por %p137_p6, %p55_p1  ;;  %p143_p10 = scmp.eq.s32.totalorder %s843_s22, 1 }
  0x16   : > { %s1559_s27 = scalar_select %p1286_p8, 1, 0 }
  0x17   : > { %s1560_s28 = scalar_select %p1290_p9, 1, 0 }
  0x18   : > { %s1295_s29 = scalar_select %p46_p7, %s1186_s17, %s48_s24  }
  0x19   : > { %p1297_p11 = por %p143_p10, %p61_p3  ;;  %p935_p13 = scmp.lt.s32.totalorder %s1198_s20, 2 }
  0x1a   : > { %1561 = sst [smem:[#allocation18_spill]] %s1295_s29  ;;  %s1304_s5 = sand.u32 1, %s1186_s17  }
  0x1b   : > { %s1562_s30 = scalar_select %p1297_p11, 1, 0 }
  0x1c   : > { %s212_s6 = sand.u32 1, %s1198_s20   ;;  %p1309_p0 = pnand %p935_p13, %p1278_p4 }
  0x1d   : > { %s849_s8 = sshll.u32 %s1194_s19, 4  ;;  %s215_s9 = scalar_lea.vmem [#allocation7], %s1304_s5 }
  0x1e   : > { %s222_s10 = sshll.u32 %s215_s9, 4  ;;  %s1564_s1 = sld [smem:[#allocation20_spill]]  ;;  %s1320_s10 = int_to_ptr.vmem [resolvable:$true] %s222_s10 }
  0x1f   : > { %s1323_s22 = scalar_lea.sflag [#allocation8], %s212_s6  ;;  %p1329_p2 = pneg %p1309_p0 }
  0x24   : > { %s1318_s13 = scalar_lea.hbm %s1564_s1, %s849_s8  ;;  %s995_s9 = scalar_lea.hbm %s1564_s1, 32 }
  0x25   : > { %s990_s24 = scalar_lea.hbm %s1318_s13, 16  ;;  %p996_p5 = scmp.lt.u32.totalorder %s1318_s13, %s1564_s1 }
  0x26   : > { %p991_p1 = scmp.ne.s32.totalorder %s1318_s13, %s990_s24  ;;  %p997_p6 = scmp.lt.u32.totalorder %s995_s9, %s990_s24 }
  0x27   : > { %p999_p10 = scmp.lt.u32.totalorder %s990_s24, %s1318_s13 }
  0x28   : > { %p993_p3 = pnand %p1329_p2, %p991_p1  ;;  %p998_p7 = por %p997_p6, %p996_p5 }
  0x2a   : > { %p994_p4 = pneg %p993_p3  ;;  %p1000_p13 = por %p999_p10, %p998_p7 }
  0x2c   : > { %p1001_p12 = pnand %p1000_p13, %p994_p4 }
  0x2e   : > { %1004 = shalt.err (!%p1001_p12)
}
  0x2f   : > { %s1005_s6 = scalar_lea.vmem %s1320_s10, 16  ;;  %s1200_s26 = smov [#allocation7]  }
  0x30   : > { %p1006_p1 = scmp.ne.s32.totalorder %s1320_s10, %s1005_s6  ;;  %s1010_s8 = sshll.u32 %s1200_s26, 4  ;;  %s1011_s8 = int_to_ptr.vmem [resolvable:$false] %s1010_s8 }
  0x31   : > { %s1012_s11 = scalar_lea.vmem %s1011_s8, 32  ;;  %p1013_p9 = scmp.lt.s32.totalorder %s1320_s10, %s1011_s8 }
  0x32   : > { %p1008_p3 = pnand %p1006_p1, %p1329_p2  ;;  %p1014_p8 = scmp.lt.s32.totalorder %s1012_s11, %s1005_s6 }
  0x34   : > { %p1009_p11 = pneg %p1008_p3  ;;  %p1015_p5 = por %p1014_p8, %p1013_p9 }
  0x36   : > { %p1016_p6 = pnand %p1015_p5, %p1009_p11 }
  0x38   : > { %1019 = shalt.err (!%p1016_p6)
}
  0x39   : > { %924 = dma.hbm_to_vmem [thread:$0]  (!%p1309_p0), %s1318_s13, 16, %s1320_s10, %s1323_s22  }
  0x3a   : > { %p853_p12 = scmp.ge.s32.totalorder %s1198_s20, 1  ;;  %p248_p4 = scmp.lt.s32.totalorder %s1198_s20, 3 }
  0x3b   : > { %s846_s9 = sshll.u32 %s1304_s5, 4  ;;  %s872_s12 = sshll.u32 %s1194_s19, 8 }
  0x3c   : > { %p1355_p7 = pnand %p853_p12, %p248_p4  ;;  %s1567_s0 = sld [smem:[#allocation19_spill]] }
  0x3d   : > { %s193_s11 = scalar_lea.vmem [#allocation4], %s846_s9  ;;  %s190_s10 = scalar_lea.sflag [#allocation5], %s1304_s5 }
  0x3e   : > { %s1566_s24 = scalar_select %p1355_p7, 1, 0 }
  0x3f   : > { %s202_s14 = sshll.u32 %s193_s11, 4  ;;  %s1366_s14 = int_to_ptr.vmem [resolvable:$true] %s202_s14 }
  0x42   : > { %s1364_s8 = scalar_lea.hbm %s1567_s0, %s872_s12  ;;  %s1025_s6 = scalar_lea.hbm %s1567_s0, 512 }
  0x43   : > { %s1020_s13 = scalar_lea.hbm %s1364_s8, 256  ;;  %p1026_p10 = scmp.lt.u32.totalorder %s1364_s8, %s1567_s0 }
  0x44   : > { %p1021_p8 = scmp.ne.s32.totalorder %s1364_s8, %s1020_s13  ;;  %p1027_p13 = scmp.lt.u32.totalorder %s1025_s6, %s1020_s13 }
  0x45   : > { %p1029_p3 = scmp.lt.u32.totalorder %s1020_s13, %s1364_s8 }
  0x46   : > { %p1023_p9 = pnand %p1021_p8, %p1329_p2  ;;  %p1028_p1 = por %p1027_p13, %p1026_p10 }
  0x48   : > { %p1024_p11 = pneg %p1023_p9  ;;  %p1030_p5 = por %p1029_p3, %p1028_p1 }
  0x4a   : > { %p1031_p6 = pnand %p1030_p5, %p1024_p11 }
  0x4c   : > { %1034 = shalt.err (!%p1031_p6)
}
  0x4d   : > { %s1035_s9 = scalar_lea.vmem %s1366_s14, 256  ;;  %s1201_s1 = smov [#allocation4]  }
  0x4e   : > { %p1036_p12 = scmp.ne.s32.totalorder %s1366_s14, %s1035_s9  ;;  %s1040_s23 = sshll.u32 %s1201_s1, 4  ;;  %s1041_s23 = int_to_ptr.vmem [resolvable:$false] %s1040_s23 }
  0x4f   : > { %s1042_s11 = scalar_lea.vmem %s1041_s23, 512  ;;  %p1043_p9 = scmp.lt.s32.totalorder %s1366_s14, %s1041_s23 }
  0x50   : > { %p1038_p4 = pnand %p1036_p12, %p1329_p2  ;;  %p1044_p7 = scmp.lt.s32.totalorder %s1042_s11, %s1035_s9 }
  0x52   : > { %p1039_p8 = pneg %p1038_p4  ;;  %p1045_p10 = por %p1044_p7, %p1043_p9 }
  0x54   : > { %p1046_p13 = pnand %p1045_p10, %p1039_p8 }
  0x56   : > { %1049 = shalt.err (!%p1046_p13)
}
  0x57   : > { %s1202_s13 = smov 128   ;;  %s1203_s6 = smov 8  }
  0x58   : > { %921 = dma.hbm_to_vmem [thread:$0]  (!%p1309_p0), %s1364_s8, 256, %s1366_s14, %s190_s10, %s1202_s13, %s1202_s13, %s1203_s6  }
  0x59   : > { %s873_s12 = sshll.u32 %s1194_s19, 9  ;;  %s1568_s23 = sshll.u32 %s1304_s5, 5 }
  0x5a   : > { %s1399_s1 = scalar_lea.hbm %s1549_s2, %s873_s12  ;;  %s233_s11 = scalar_lea.vmem [#allocation9], %s1568_s23 }
  0x5b   : > { %s240_s0 = sshll.u32 %s233_s11, 4  ;;  %s1050_s29 = scalar_lea.hbm %s1399_s1, 512  ;;  %s1403_s0 = int_to_ptr.vmem [resolvable:$true] %s240_s0 }
  0x5c   : > { %p1051_p7 = scmp.ne.s32.totalorder %s1399_s1, %s1050_s29  ;;  %s1055_s10 = scalar_lea.hbm %s1549_s2, 1024 }
  0x5d   : > { %p1056_p3 = scmp.lt.u32.totalorder %s1399_s1, %s1549_s2  ;;  %p1057_p5 = scmp.lt.u32.totalorder %s1055_s10, %s1050_s29 }
  0x5e   : > { %p1053_p11 = pnand %p1051_p7, %p1329_p2  ;;  %p1059_p12 = scmp.lt.u32.totalorder %s1050_s29, %s1399_s1 }
  0x5f   : > { %p1058_p6 = por %p1057_p5, %p1056_p3 }
  0x60   : > { %p1054_p1 = pneg %p1053_p11 }
  0x61   : > { %p1060_p4 = por %p1059_p12, %p1058_p6 }
  0x63   : > { %p1061_p8 = pnand %p1060_p4, %p1054_p1 }
  0x65   : > { %1064 = shalt.err (!%p1061_p8)
}
  0x66   : > { %s1065_s5 = scalar_lea.vmem %s1403_s0, 512  ;;  %s1204_s9 = smov [#allocation9]  }
  0x67   : > { %p1066_p9 = scmp.ne.s32.totalorder %s1403_s0, %s1065_s5  ;;  %s1070_s23 = sshll.u32 %s1204_s9, 4  ;;  %s1071_s23 = int_to_ptr.vmem [resolvable:$false] %s1070_s23 }
  0x68   : > { %s1072_s11 = scalar_lea.vmem %s1071_s23, 1024  ;;  %p1073_p7 = scmp.lt.s32.totalorder %s1403_s0, %s1071_s23 }
  0x69   : > { %p1068_p10 = pnand %p1066_p9, %p1329_p2  ;;  %p1074_p11 = scmp.lt.s32.totalorder %s1072_s11, %s1065_s5 }
  0x6b   : > { %p1069_p13 = pneg %p1068_p10  ;;  %p1075_p3 = por %p1074_p11, %p1073_p7 }
  0x6d   : > { %p1076_p5 = pnand %p1075_p3, %p1069_p13 }
  0x6f   : > { %1079 = shalt.err (!%p1076_p5)
}
  0x70   : > { %927 = dma.hbm_to_vmem [thread:$0]  (!%p1309_p0), %s1399_s1, 512, %s1403_s0, %s1323_s22, %s1202_s13, %s1202_s13, %s1203_s6  }
  0x71   : > { %p1569_p2 = scmp.ne.s32.totalorder %s1566_s24, 0 }
  0x72   : > { %s1433_s29 = sand.u32 (!%p1569_p2), 1, %s1182_s16   ;;  %p1570_p1 = scmp.ne.s32.totalorder (!%p1569_p2), %s1559_s27, 0 }
  0x73   : > { %252 = sbr.rel (%p1569_p2) target bundleno = 529 (0x211), region = 32  ;;  %s854_s25 = sshll.u32 (!%p1569_p2), %s1433_s29, 4 }
  0x74   : > { %s255_s14 = scalar_lea.sflag (!%p1569_p2), [#allocation5], %s1433_s29  ;;  %s258_s8 = scalar_lea.vmem (!%p1569_p2), [#allocation4], %s854_s25 }
  0x7a   : > { %1161 = dma.done.wait (%p1570_p1), %s255_s14, 256  }
  0x7b   : > { %1163 = vsyncadd (%p1570_p1), %s255_s14, 4294967040  ;;  %s263_s0 = sand.u32 1, %s1266_s21   ;;  %s266_s22 = scalar_lea.vmem [#allocation7], %s1433_s29 }
  0x7c   : > { %s264_s7 = scalar_lea.sflag [#allocation8], %s263_s0 }
  0x7d   : > { %1165 = dma.done.wait (%p1570_p1), %s264_s7, 528  }
  0x7e   : > { %1167 = vsyncadd (%p1570_p1), %s264_s7, 4294966768  ;;  %vm320_vm0 = vcmask 261120   ;;  %vm318_vm1 = vcmask 253952   ;;  %v1205_v0 = vmov 0.0   ;;  %v325_v1 = vld [vmem:[%s258_s8] sm:$0xff]  ;;  %v326_v2 = vld [vmem:[%s258_s8 + $0x8] sm:$0xff] }
  0x7f   : > { %319 = vst.msk [vmem:[#allocation2] sm:$0x1] %vm318_vm1, %v1205_v0  ;;  %345 = vxpose.xlu0.b32.start [1/2] (short) (narrow) %v325_v1, 32  ;;  %v329_v3 = vsel %vm320_vm0, %v325_v1, 0.0  ;;  %v330_v4 = vsel %vm320_vm0, %v326_v2, 0.0  ;;  %v904_v5 = vpack.c.bf16 %v326_v2, %v325_v1  ;;  %vm541_vm2 = vcmask 1040384  }
  0x80   : > { %321 = vst.msk [vmem:[#allocation3] sm:$0xff] %vm320_vm0, %v1205_v0  ;;  %322 = vst.msk [vmem:[#allocation3 + $0x8] sm:$0xff] %vm320_vm0, %v1205_v0  ;;  %v331_v6 = vadd.f32 %v330_v4, %v329_v3  ;;  %vm377_vm3 = vcmask 130048   ;;  %vm528_vm4 = vcmask 7168   ;;  %v634_v26 = vld [vmem:[%s266_s22] sm:$0x1] }
  0x81   : > { %323 = vst.msk [vmem:[#allocation3 + $0x10] sm:$0xff] %vm320_vm0, %v1205_v0  ;;  %324 = vst.msk [vmem:[#allocation3 + $0x18] sm:$0xff] %vm320_vm0, %v1205_v0  ;;  %905 = vmatprep.subr.bf16.mxu0 %v904_v5  ;;  %v635_v27 = vmul.f32 0.9, %v634_v26  ;;  %s867_s21 = sshll.u32 %s1190_s18, 4  ;;  %s305_s27 = scalar_lea.vmem [#allocation10], %s1433_s29 }
  0x82   : > { %v332_v7 = vrot.slane %v331_v6, 4  ;;  %907 = vmatpush3.bf16.msra.mxu0 %v904_v5  ;;  %s677_s24 = sshll.u32 %s305_s27, 4  ;;  %s1463_s1 = scalar_lea.hbm %s1550_s3, %s867_s21  ;;  %s678_s24 = int_to_ptr.vmem [resolvable:$true] %s677_s24 }
  0x83   : > { %346 = vxpose.xlu0.b32.end [2/2] (short) (narrow) %v326_v2, 32  ;;  %s660_s10 = scalar_lea.sflag [#allocation6], %s1433_s29  ;;  %s1080_s12 = scalar_lea.vmem %s678_s24, 16 }
  0x84   : > { %v333_v8 = vadd.f32 %v332_v7, %v331_v6  ;;  %p1081_p0 = scmp.ne.s32.totalorder %s678_s24, %s1080_s12  ;;  %p1571_p6 = scmp.ne.s32.totalorder %s1560_s28, 0 }
  0x85   : > { %s1206_s26 = smov [#allocation10]  }
  0x86   : > { %v334_v9 = vrot.slane %v333_v8, 2  ;;  %v327_v12 = vld [vmem:[#allocation2] sm:$0x1]  ;;  %p1082_p12 = pnand %p1081_p0, %p1571_p6  ;;  %s1084_s5 = sshll.u32 %s1206_s26, 4  ;;  %s1085_s5 = int_to_ptr.vmem [resolvable:$false] %s1084_s5 }
  0x87   : > { %s1086_s9 = scalar_lea.vmem %s1085_s5, 32  ;;  %p1087_p8 = scmp.lt.s32.totalorder %s678_s24, %s1085_s5 }
  0x88   : > { %v335_v10 = vadd.f32 %v334_v9, %v333_v8  ;;  %p1083_p4 = pneg %p1082_p12  ;;  %p1088_p9 = scmp.lt.s32.totalorder %s1086_s9, %s1080_s12 }
  0x8a   : > { %v336_v11 = vrot.slane %v335_v10, 1  ;;  %p1089_p10 = por %p1088_p9, %p1087_p8 }
  0x8c   : > { %v337_v13 = vadd.f32 %v336_v11, %v335_v10  ;;  %p1090_p13 = pnand %p1089_p10, %p1083_p4 }
  0x8e   : > { %v338_v14 = vadd.f32 %v337_v13, %v327_v12 }
  0x90   : > { %340 = vst.msk [vmem:[#allocation2] sm:$0x1] %vm318_vm1, %v338_v14 }
  0x97   : > { %v486_v15 = vld [vmem:[#allocation2] sm:$0x1] }
  0x98   : > { %v487_v16 = vmul.f32 0.0625, %v486_v15 }
  0x9a   : > { %496 = vxpose.xlu1.b32.start.end [1/1] (short) (narrow) %v487_v16, 32  ;;  %896 = vmatprep.subr.msk.mxu1 %vm541_vm2, %v487_v16  ;;  %v636_v25 = vmul.f32 0.1, %v487_v16 }
  0x9b   : > { %897 = vmatpush3.msk.msra.mxu1 %vm541_vm2, %v487_v16 }
  0x9c   : > { %v637_v28 = vadd.f32 %v636_v25, %v635_v27 }
  0x9e   : > { %638 = vst.msk [vmem:[%s305_s27] sm:$0x1] %vm318_vm1, %v637_v28 }
  0xff   : > { %v361_v17 = vpop.trf.xlu0 }
 0x100   : > { %890 = vmatprep.mubr.msk.f32.mxu0 %vm377_vm3, %v361_v17 }
 0x103   : > { %v362_v18 = vpop.trf.xlu0 }
 0x104   : > { %891 = vmatmul.mubr.msk.f32.vlgmr.msra.gmra.mrb[0].mxu0 %vm377_vm3, %v362_v18 }
 0x107   : > { %v363_v19 = vpop.trf.xlu0 }
 0x108   : > { %893 = vmatprep.mubr.msk.f32.mxu0 %vm377_vm3, %v363_v19 }
 0x10b   : > { %v364_v20 = vpop.trf.xlu0 }
 0x10c   : > { %894 = vmatmul.mubr.msk.f32.gmra.mrb[2].mxu0 %vm377_vm3, %v364_v20 }
 0x11a   : > { %v512_v21 = vpop.trf.xlu1 }
 0x11b   : > { %898 = vmatprep.mubr.msk.f32.mxu1 %vm528_vm4, %v512_v21 }
 0x11e   : > { %v513_v22 = vpop.trf.xlu1 }
 0x11f   : > { %899 = vmatmul.mubr.msk.f32.vlgmr.msra.gmra.mrb[0].mxu1 %vm528_vm4, %v513_v22 }
 0x122   : > { %v514_v23 = vpop.trf.xlu1 }
 0x123   : > { %901 = vmatprep.mubr.msk.f32.mxu1 %vm528_vm4, %v514_v23 }
 0x126   : > { %v515_v24 = vpop.trf.xlu1 }
 0x127   : > { %902 = vmatmul.mubr.msk.f32.gmra.mrb[2].mxu1 %vm528_vm4, %v515_v24 }
 0x128   : > { %1093 = shalt.err (!%p1090_p13)
}
 0x129   : > { %s1094_s23 = scalar_lea.hbm %s1463_s1, 16  ;;  %s1098_s14 = scalar_lea.hbm %s1550_s3, 32 }
 0x12a   : > { %p1095_p7 = scmp.ne.s32.totalorder %s1463_s1, %s1094_s23  ;;  %p1099_p5 = scmp.lt.u32.totalorder %s1463_s1, %s1550_s3 }
 0x12b   : > { %p1100_p2 = scmp.lt.u32.totalorder %s1098_s14, %s1094_s23  ;;  %p1102_p0 = scmp.lt.u32.totalorder %s1094_s23, %s1463_s1 }
 0x12c   : > { %p1096_p11 = pnand %p1095_p7, %p1571_p6 }
 0x12d   : > { %p1101_p1 = por %p1100_p2, %p1099_p5 }
 0x12e   : > { %p1097_p3 = pneg %p1096_p11 }
 0x12f   : > { %p1103_p12 = por %p1102_p0, %p1101_p1 }
 0x131   : > { %p1104_p4 = pnand %p1103_p12, %p1097_p3 }
 0x133   : > { %1107 = shalt.err (!%p1104_p4)
}
 0x134   : > { %914 = dma.vmem_to_hbm [thread:$0]  (%p1571_p6), %s678_s24, 16, %s1463_s1, %s660_s10   ;;  %v342_v29 = vld [vmem:[#allocation3 + $0x8] sm:$0xff]  ;;  %v341_v30 = vld [vmem:[#allocation3] sm:$0xff]  ;;  %v344_v35 = vld [vmem:[#allocation3 + $0x18] sm:$0xff] }
 0x135   : > { %v343_v36 = vld [vmem:[#allocation3 + $0x10] sm:$0xff]  ;;  %s855_s7 = sshll.u32 %s1433_s29, 5  ;;  %s874_s24 = sshll.u32 %s1190_s18, 9 }
 0x136   : > { %s275_s22 = scalar_lea.vmem [#allocation9], %s855_s7  ;;  %s312_s21 = scalar_lea.vmem [#allocation11], %s855_s7 }
 0x137   : > { %v640_v44 = vld [vmem:[%s275_s22 + $0x8] sm:$0xff]  ;;  %v639_v46 = vld [vmem:[%s275_s22] sm:$0xff]  ;;  %v642_v60 = vld [vmem:[%s275_s22 + $0x18] sm:$0xff]  ;;  %s690_s27 = sshll.u32 %s312_s21, 4  ;;  %s1496_s1 = scalar_lea.hbm %s1551_s4, %s874_s24  ;;  %s1491_s27 = int_to_ptr.vmem [resolvable:$true] %s690_s27 }
 0x138   : > { %v644_v49 = vmul.f32 0.9, %v640_v44  ;;  %v643_v52 = vmul.f32 0.9, %v639_v46  ;;  %v641_v62 = vld [vmem:[%s275_s22 + $0x10] sm:$0xff]  ;;  %s664_s10 = scalar_lea.sflag [#allocation12], %s1433_s29 }
 0x139   : > { %v646_v1 = vmul.f32 0.9, %v642_v60  ;;  %v645_v4 = vmul.f32 0.9, %v641_v62  ;;  %s1108_s12 = scalar_lea.vmem %s1491_s27, 512  ;;  %s1207_s18 = smov [#allocation11]  }
 0x13a   : > { %p1109_p8 = scmp.ne.s32.totalorder %s1491_s27, %s1108_s12  ;;  %s1112_s26 = sshll.u32 %s1207_s18, 4  ;;  %s1113_s26 = int_to_ptr.vmem [resolvable:$false] %s1112_s26 }
 0x13b   : > { %s1114_s5 = scalar_lea.vmem %s1113_s26, 1024  ;;  %p1115_p13 = scmp.lt.s32.totalorder %s1491_s27, %s1113_s26 }
 0x13c   : > { %p1110_p9 = pnand %p1109_p8, %p1571_p6  ;;  %p1116_p7 = scmp.lt.s32.totalorder %s1114_s5, %s1108_s12 }
 0x13e   : > { %p1111_p10 = pneg %p1110_p9  ;;  %p1117_p11 = por %p1116_p7, %p1115_p13 }
 0x140   : > { %p1118_p3 = pnand %p1117_p11, %p1111_p10 }
 0x1d7   : > { %v892_v31 = vpop.f32.mrb[0].mxu0 }
 0x1d8   : > { %v476_v32 = vadd.f32 %v892_v31, %v342_v29  ;;  %v456_v33 = vpop.f32.mrb[1].mxu0 }
 0x1d9   : > { %v475_v34 = vadd.f32 %v456_v33, %v341_v30 }
 0x1da   : > { %480 = vst.msk [vmem:[#allocation3 + $0x8] sm:$0xff] %vm320_vm0, %v476_v32 }
 0x1db   : > { %479 = vst.msk [vmem:[#allocation3] sm:$0xff] %vm320_vm0, %v475_v34 }
 0x1df   : > { %v895_v37 = vpop.f32.mrb[2].mxu0 }
 0x1e0   : > { %v478_v38 = vadd.f32 %v895_v37, %v344_v35  ;;  %v466_v39 = vpop.f32.mrb[3].mxu0 }
 0x1e1   : > { %v477_v40 = vadd.f32 %v466_v39, %v343_v36  ;;  %v489_v41 = vld [vmem:[#allocation3 + $0x8] sm:$0xff] }
 0x1e2   : > { %482 = vst.msk [vmem:[#allocation3 + $0x18] sm:$0xff] %vm320_vm0, %v478_v38  ;;  %v488_v42 = vld [vmem:[#allocation3] sm:$0xff]  ;;  %v493_v43 = vmul.f32 0.0625, %v489_v41 }
 0x1e3   : > { %481 = vst.msk [vmem:[#allocation3 + $0x10] sm:$0xff] %vm320_vm0, %v477_v40  ;;  %v492_v45 = vmul.f32 0.0625, %v488_v42 }
 0x1e9   : > { %v491_v53 = vld [vmem:[#allocation3 + $0x18] sm:$0xff] }
 0x1ea   : > { %v490_v55 = vld [vmem:[#allocation3 + $0x10] sm:$0xff]  ;;  %v495_v58 = vmul.f32 0.0625, %v491_v53 }
 0x1eb   : > { %v494_v61 = vmul.f32 0.0625, %v490_v55 }
 0x1f2   : > { %v900_v47 = vpop.f32.mrb[0].mxu1 }
 0x1f3   : > { %v631_v48 = vsub.f32 %v493_v43, %v900_v47  ;;  %v611_v50 = vpop.f32.mrb[1].mxu1 }
 0x1f4   : > { %v630_v51 = vsub.f32 %v492_v45, %v611_v50 }
 0x1f5   : > { %v648_v54 = vmul.f32 0.1, %v631_v48 }
 0x1f6   : > { %v647_v56 = vmul.f32 0.1, %v630_v51 }
 0x1f7   : > { %v652_v57 = vadd.f32 %v648_v54, %v644_v49 }
 0x1f8   : > { %v651_v59 = vadd.f32 %v647_v56, %v643_v52 }
 0x1f9   : > { %656 = vst.msk [vmem:[%s312_s21 + $0x8] sm:$0xff] %vm320_vm0, %v652_v57 }
 0x1fa   : > { %655 = vst.msk [vmem:[%s312_s21] sm:$0xff] %vm320_vm0, %v651_v59  ;;  %v903_v63 = vpop.f32.mrb[2].mxu1 }
 0x1fb   : > { %v633_v0 = vsub.f32 %v495_v58, %v903_v63  ;;  %v621_v2 = vpop.f32.mrb[3].mxu1 }
 0x1fc   : > { %v632_v3 = vsub.f32 %v494_v61, %v621_v2 }
 0x1fd   : > { %v650_v5 = vmul.f32 0.1, %v633_v0 }
 0x1fe   : > { %v649_v6 = vmul.f32 0.1, %v632_v3 }
 0x1ff   : > { %v654_v7 = vadd.f32 %v650_v5, %v646_v1 }
 0x200   : > { %v653_v8 = vadd.f32 %v649_v6, %v645_v4 }
 0x201   : > { %658 = vst.msk [vmem:[%s312_s21 + $0x18] sm:$0xff] %vm320_vm0, %v654_v7 }
 0x202   : > { %657 = vst.msk [vmem:[%s312_s21 + $0x10] sm:$0xff] %vm320_vm0, %v653_v8 }
 0x203   : > { %1121 = shalt.err (!%p1118_p3)
}
 0x204   : > { %s1122_s9 = scalar_lea.hbm %s1496_s1, 512  ;;  %s1126_s25 = scalar_lea.hbm %s1551_s4, 1024 }
 0x205   : > { %p1123_p5 = scmp.ne.s32.totalorder %s1496_s1, %s1122_s9  ;;  %p1127_p0 = scmp.lt.u32.totalorder %s1496_s1, %s1551_s4 }
 0x206   : > { %p1128_p12 = scmp.lt.u32.totalorder %s1126_s25, %s1122_s9  ;;  %p1130_p8 = scmp.lt.u32.totalorder %s1122_s9, %s1496_s1 }
 0x207   : > { %p1124_p2 = pnand %p1123_p5, %p1571_p6 }
 0x208   : > { %p1129_p4 = por %p1128_p12, %p1127_p0 }
 0x209   : > { %p1125_p1 = pneg %p1124_p2 }
 0x20a   : > { %p1131_p9 = por %p1130_p8, %p1129_p4 }
 0x20c   : > { %p1132_p10 = pnand %p1131_p9, %p1125_p1 }
 0x20e   : > { %1135 = shalt.err (!%p1132_p10)
}
 0x20f   : > { %s1208_s0 = smov 128   ;;  %s1209_s7 = smov 8  }
 0x210   : > { %915 = dma.vmem_to_hbm [thread:$0]  (%p1571_p6), %s1491_s27, 512, %s1496_s1, %s664_s10, %s1208_s0, %s1208_s0, %s1209_s7  }
 0x211 PF: > { %s705_s22 = sand.u32 1, %s1178_s15   ;;  %p1572_p13 = scmp.ne.s32.totalorder %s1562_s30, 0 }
 0x212   : > { %p1573_p7 = scmp.ge.s32.totalorder %s1198_s20, 2  ;;  %s706_s21 = scalar_lea.sflag [#allocation6], %s705_s22 }
 0x214   : > { %p929_p11 = pnand %p1573_p7, %p1572_p13 }
 0x216   : > { %1169 = dma.done.wait (!%p929_p11), %s706_s21, 16  }
 0x217   : > { %1171 = vsyncadd (!%p929_p11), %s706_s21, 4294967280  ;;  %s714_s24 = scalar_lea.sflag [#allocation12], %s705_s22 }
 0x218   : > { %1173 = dma.done.wait (!%p929_p11), %s714_s24, 512  }
 0x219   : > { %1175 = vsyncadd (!%p929_p11), %s714_s24, 4294966784  ;;  %s27_s20 = sadd.s32 1, %s1198_s20   ;;  %s1574_s28 = sld [smem:[#allocation18_spill]] }
 0x21a   : > { %p24_p3 = scmp.ge.s32.totalorder %s27_s20, 4   ;;  %s1575_s29 = sld [smem:[#allocation17_spill]] }
 0x21b   : > { %s1576_s15 = smov %s1182_s16  ;;  %s1577_s16 = smov %s1186_s17 }
 0x21c   : > { %s1579_s18 = smov %s1194_s19  ;;  %26 = sbr.rel (!%p24_p3) target bundleno = 13 (0xd), region = 126 }
 0x21f   : > { %s1578_s17 = smov %s1574_s28 }
 0x220   : > { %s1580_s19 = smov %s1575_s29 }
 0x223   :  { %719 = vsyncpa [#allocation5], 1 }
 0x224   :  { %721 = vsyncpa [#allocation5 + $0x1], 1 }
 0x225   :  { %722 = vsyncpa [#allocation8], 1 }
 0x226   :  { %724 = vsyncpa [#allocation8 + $0x1], 1 }
 0x227   :  { %725 = vsyncpa [#allocation6], 1 }
 0x228   :  { %727 = vsyncpa [#allocation6 + $0x1], 1 }
 0x229   :  { %728 = vsyncpa [#allocation12], 1 }
 0x22a   :  { %730 = vsyncpa [#allocation12 + $0x1], 1 }

</bundles_post_ra>
